<compile_context>
chip_gen: v6e
topology: v6e:2x2x1
jax: 0.10.0
libtpu: 0.0.40
codegen_flags: <defaults>
</compile_context>

<pallas_src>
import jax
import jax.numpy as jnp
from jax.experimental import pallas as pl
from jax.experimental.pallas import tpu as pltpu


def _round_up(x: int, m: int) -> int:
    return (x + m - 1) // m * m


def _tpu_defaults():
    """Generation-aware defaults: (physical VMEM bytes, MXU N width)."""
    vmem_phys = 128 * 1024 * 1024
    mxu_n = 128
    kind = ""
    try:
        kind = jax.devices()[0].device_kind.lower()
    except Exception:
        pass
    try:
        vmem_phys = int(pltpu.get_tpu_info().vmem_capacity_bytes)
    except Exception:
        if "v7" in kind:
            vmem_phys = 64 * 1024 * 1024
    if ("v6" in kind) or ("v7" in kind) or ("trillium" in kind):
        mxu_n = 256
    return vmem_phys, mxu_n


# ---------------------------------------------------------------------------
# Kernels
# ---------------------------------------------------------------------------
def _linear_kernel(x_ref, wt_ref, b_ref, o_ref):
    # Cast activations in-kernel (free on the VPU vs. an extra HBM pass).
    x = x_ref[...].astype(wt_ref.dtype)
    acc = jnp.dot(x, wt_ref[...], preferred_element_type=jnp.float32)
    o_ref[...] = (acc + b_ref[...].astype(jnp.float32)).astype(o_ref.dtype)


def _linear_kernel_ktiled(x_ref, wt_ref, b_ref, o_ref, acc_ref):
    @pl.when(pl.program_id(2) == 0)
    def _():
        acc_ref[...] = jnp.zeros_like(acc_ref)

    x = x_ref[...].astype(wt_ref.dtype)
    acc_ref[...] += jnp.dot(x, wt_ref[...], preferred_element_type=jnp.float32)

    @pl.when(pl.program_id(2) == pl.num_programs(2) - 1)
    def _():
        o_ref[...] = (acc_ref[...] + b_ref[...].astype(jnp.float32)).astype(o_ref.dtype)


# ---------------------------------------------------------------------------
# Forward
# ---------------------------------------------------------------------------
def _linear_forward(x, wt_p, b_p, d_out, *, vmem_phys, mxu_n):
    """y = x @ wt_p + b with wt_p pre-transposed/padded to (D_in, N_p)."""
    B, D_in = x.shape
    _, N_p = wt_p.shape
    out_dtype = x.dtype
    x_item = jnp.dtype(x.dtype).itemsize
    w_item = jnp.dtype(wt_p.dtype).itemsize
    o_item = jnp.dtype(out_dtype).itemsize
    weight_bytes = D_in * N_p * w_item

    # ---------------- small path: single VMEM-resident block, no grid -------
    sublane = 16 if jnp.dtype(out_dtype) == jnp.dtype(jnp.bfloat16) else 8
    B_p = _round_up(B, sublane)
    small_bytes = (B_p * D_in * x_item + weight_bytes + N_p * 4
                   + B_p * N_p * o_item)
    small_thresh = (4 << 20) if vmem_phys <= (64 << 20) else (8 << 20)
    if small_bytes <= small_thresh:
        x_p = jnp.pad(x, ((0, B_p - B), (0, 0))) if B_p != B else x
        cost = pl.CostEstimate(flops=2 * B_p * D_in * N_p, transcendentals=0,
                               bytes_accessed=small_bytes)
        y_p = pl.pallas_call(
            _linear_kernel,
            out_shape=jax.ShapeDtypeStruct((B_p, N_p), out_dtype),
            in_specs=[
                pl.BlockSpec(memory_space=pltpu.MemorySpace.VMEM),
                pl.BlockSpec(memory_space=pltpu.MemorySpace.VMEM),
                pl.BlockSpec(memory_space=pltpu.MemorySpace.VMEM),
            ],
            out_specs=pl.BlockSpec(memory_space=pltpu.MemorySpace.VMEM),
            cost_estimate=cost,
        )(x_p, wt_p, b_p)
        return y_p[:B, :d_out]

    # Generation-aware budget for the double-buffered working set.
    budget = min(48 << 20, int(vmem_phys * 0.45))

    # ---------------- medium path: weight resident in VMEM, DMA'd once ------
    def ws_resident(tm_):
        return (2 * (tm_ * D_in * x_item + tm_ * N_p * o_item)
                + 2 * weight_bytes + 2 * N_p * 4)

    use_resident = False
    tm_a = 512
    if weight_bytes <= (12 << 20):
        while tm_a > 8 and ws_resident(tm_a) > budget:
            tm_a //= 2
        use_resident = ws_resident(tm_a) <= budget

    if use_resident:
        tm = max(8, min(tm_a, _round_up(B, 8)))
        ws = ws_resident(tm)
        vmem_limit = min(int(vmem_phys * 0.75), max(int(ws * 1.3), 16 << 20))
        cost = pl.CostEstimate(
            flops=2 * B * D_in * N_p, transcendentals=0,
            bytes_accessed=(B * D_in * x_item + weight_bytes + N_p * 4
                            + B * N_p * o_item))
        y_p = pl.pallas_call(
            _linear_kernel,
            out_shape=jax.ShapeDtypeStruct((B, N_p), out_dtype),
            grid=(pl.cdiv(B, tm),),
            in_specs=[
                pl.BlockSpec((tm, D_in), lambda i: (i, 0)),
                pl.BlockSpec((D_in, N_p), lambda i: (0, 0)),   # constant -> DMA'd once
                pl.BlockSpec((1, N_p), lambda i: (0, 0)),
            ],
            out_specs=pl.BlockSpec((tm, N_p), lambda i: (i, 0)),
            compiler_params=pltpu.CompilerParams(
                dimension_semantics=("parallel",),
                vmem_limit_bytes=vmem_limit),
            cost_estimate=cost,
        )(x, wt_p, b_p)
        return y_p[:, :d_out]

    # ---------------- large path: (batch, N, K) tiling with f32 accumulator --
    tn = min(mxu_n, N_p)
    tk = D_in if D_in <= 512 else 512          # multiple of 128 when K is tiled

    def ws_ktiled(tm_):
        return (2 * (tm_ * tk * x_item + tk * tn * w_item + tm_ * tn * o_item)
                + tm_ * tn * 4 + 2 * tn * 4)

    tm = 512
    while tm > 8 and ws_ktiled(tm) > budget:
        tm //= 2
    tm = max(8, min(tm, _round_up(B, 8)))

    nB, nN, nK = pl.cdiv(B, tm), pl.cdiv(N_p, tn), pl.cdiv(D_in, tk)
    ws = ws_ktiled(tm)
    vmem_limit = min(int(vmem_phys * 0.75), max(int(ws * 1.3), 16 << 20))
    cost = pl.CostEstimate(
        flops=2 * B * D_in * N_p, transcendentals=0,
        bytes_accessed=(nN * B * D_in * x_item + nB * weight_bytes
                        + N_p * 4 + B * N_p * o_item))
    y_p = pl.pallas_call(
        _linear_kernel_ktiled,
        out_shape=jax.ShapeDtypeStruct((B, N_p), out_dtype),
        grid_spec=pltpu.PrefetchScalarGridSpec(
            num_scalar_prefetch=0,
            grid=(nB, nN, nK),
            in_specs=[
                pl.BlockSpec((tm, tk), lambda i, j, k: (i, k)),
                pl.BlockSpec((tk, tn), lambda i, j, k: (k, j)),
                pl.BlockSpec((1, tn), lambda i, j, k: (0, j)),
            ],
            out_specs=pl.BlockSpec((tm, tn), lambda i, j, k: (i, j)),
            scratch_shapes=[pltpu.VMEM((tm, tn), jnp.float32)],
        ),
        compiler_params=pltpu.CompilerParams(
            dimension_semantics=("parallel", "parallel", "arbitrary"),
            vmem_limit_bytes=vmem_limit),
        cost_estimate=cost,
    )(x, wt_p, b_p)
    return y_p[:, :d_out]


class PallasLinear:
    """Pallas TPU equivalent of nn.Linear(input_dim, output_dim).

    Weight preprocessing (transpose to (D_in, D_out), lane pad to a multiple of
    128, optional bf16 cast — beneficial on v5e/v6e/v7x alike) is done ONCE at
    construction, not per forward call.
    """

    def __init__(self, w, b, *, use_bf16_matmul=False):
        D_out, D_in = w.shape
        self.d_in = int(D_in)
        self.d_out = int(D_out)
        self.n_p = _round_up(self.d_out, 128)
        w_dtype = jnp.bfloat16 if use_bf16_matmul else w.dtype
        wt = jnp.asarray(w).T.astype(w_dtype)                 # (D_in, D_out)
        if self.n_p != self.d_out:
            wt = jnp.pad(wt, ((0, 0), (0, self.n_p - self.d_out)))
        b2 = jnp.asarray(b, jnp.float32).reshape(1, self.d_out)
        if self.n_p != self.d_out:
            b2 = jnp.pad(b2, ((0, 0), (0, self.n_p - self.d_out)))
        self.wt = wt                                          # (D_in, N_p)
        self.bias = b2                                        # (1, N_p), f32
        self.vmem_phys, self.mxu_n = _tpu_defaults()

    def __call__(self, x):
        return _linear_forward(x, self.wt, self.bias, self.d_out,
                               vmem_phys=self.vmem_phys, mxu_n=self.mxu_n)


if __name__ == "__main__":
    # Small shapes consistent with the module: batch=8, input_dim=32, output_dim=16
    batch, input_dim, output_dim = 8, 32, 16

    key = jax.random.PRNGKey(0)
    kx, kw, kb = jax.random.split(key, 3)

    # Parameter init mirroring nn.Linear's uniform(-1/sqrt(in), 1/sqrt(in))
    bound = 1.0 / (input_dim ** 0.5)
    w = jax.random.uniform(kw, (output_dim, input_dim), jnp.float32, -bound, bound)
    b = jax.random.uniform(kb, (output_dim,), jnp.float32, -bound, bound)
    x = jax.random.normal(kx, (batch, input_dim), jnp.float32)

    model = PallasLinear(w, b)   # one-time weight transpose/pad at init
    y = model(x)
    jax.block_until_ready(y)

    # Cross-check against plain JAX reference
    y_ref = x @ w.T + b
    assert y.shape == (batch, output_dim)
    assert jnp.allclose(y, y_ref, atol=1e-5, rtol=1e-5)

    print("KERNEL_OK")
</pallas_src>

<mosaic_0001>
module attributes {stable_mosaic.version = 11 : i64} {
  func.func @_linear_kernel(%arg0: memref<8x32xf32, #tpu.memory_space<vmem>>, %arg1: memref<32x128xf32, #tpu.memory_space<vmem>>, %arg2: memref<1x128xf32, #tpu.memory_space<vmem>>, %arg3: memref<8x128xf32, #tpu.memory_space<vmem>>) attributes {dimension_semantics = [], scalar_prefetch = 0 : i64, scratch_operands = 0 : i64, tpu.core_type = #tpu.core_type<tc>} {
    %c0 = arith.constant 0 : index
    %c0_0 = arith.constant 0 : index
    %0 = vector.load %arg0[%c0, %c0_0] : memref<8x32xf32, #tpu.memory_space<vmem>>, vector<8x32xf32>
    %c0_1 = arith.constant 0 : index
    %c0_2 = arith.constant 0 : index
    %1 = vector.load %arg1[%c0_1, %c0_2] : memref<32x128xf32, #tpu.memory_space<vmem>>, vector<32x128xf32>
    %cst = arith.constant dense<0.000000e+00> : vector<8x128xf32>
    %2 = tpu.matmul %0, %1, %cst {dimension_numbers = #tpu.dot_dimension_numbers<[1], [0], [0], [1], [0, 0, 1, 1], [], []>} : vector<8x32xf32>, vector<32x128xf32>, vector<8x128xf32> -> vector<8x128xf32>
    %c0_3 = arith.constant 0 : index
    %c0_4 = arith.constant 0 : index
    %3 = vector.load %arg2[%c0_3, %c0_4] : memref<1x128xf32, #tpu.memory_space<vmem>>, vector<1x128xf32>
    %4 = vector.broadcast %3 : vector<1x128xf32> to vector<8x128xf32>
    %5 = arith.addf %2, %4 : vector<8x128xf32>
    %c0_5 = arith.constant 0 : index
    %c0_6 = arith.constant 0 : index
    %6 = vector.load %arg3[%c0_5, %c0_6] : memref<8x128xf32, #tpu.memory_space<vmem>>, vector<8x128xf32>
    tpu.vector_store %arg3[%c0_5, %c0_6], %5 {strides = array<i32>} : memref<8x128xf32, #tpu.memory_space<vmem>>, vector<8x128xf32>,
    return
  }
}

</mosaic_0001>

<bundles_post_ra>
// kernel: tpu_custom_call.1
= control target key start
LH: loop header
LB: loop body
LE: loop exit
PB: predicated region body
PF: predicated region fallthrough
CT: control target
= control target key end

     0   :  { %8 = vsyncpa [#allocation3], 0  ;;  %s274_s0 = inlined_call_operand.hbm [shape: f32[8,32], index: 0, kind: input, shape index: {}]   ;;  %s275_s1 = inlined_call_operand.hbm [shape: f32[32,128], index: 1, kind: input, shape index: {}]   ;;  %s276_s2 = inlined_call_operand.vmem [shape: f32[1,128], index: 2, kind: input, shape index: {}]   ;;  %s277_s3 = inlined_call_operand.hbm [shape: f32[8,128], index: 3, kind: output, shape index: {}]  }
   0x1   :  { %9 = vsyncpa [#allocation6], 0 }
   0x2   :  { %10 = vsyncpa [#allocation4], 0  ;;  %s235_s12 = smov [#allocation2]   ;;  %s236_s14 = smov [#allocation5]  }
   0x3   :  { %s17_s13 = sshll.u32 %s235_s12, 4  ;;  %s26_s15 = sshll.u32 %s236_s14, 4  ;;  %s18_s13 = int_to_ptr.vmem [resolvable:$true] %s17_s13  ;;  %s27_s15 = int_to_ptr.vmem [resolvable:$true] %s26_s15 }
   0x4   :  { %s177_s16 = scalar_lea.vmem %s18_s13, 128  ;;  %p182_p1 = scmp.lt.s32.totalorder %s18_s13, %s18_s13 }
   0x5   :  { %p178_p0 = scmp.ne.s32.totalorder %s18_s13, %s177_s16  ;;  %p183_p2 = scmp.lt.s32.totalorder %s177_s16, %s177_s16 }
   0x7   :  { %p184_p3 = por %p183_p2, %p182_p1 }
   0x9   :  { %p185_p4 = pnand %p184_p3, %p178_p0 }
   0xb   :  { %188 = shalt.err (!%p185_p4)
}
   0xc   :  { %20 = dma.hbm_to_vmem [thread:$0]  %s274_s0, 128, %s18_s13, [#allocation3]  }
   0xd   :  { %s197_s19 = scalar_lea.vmem %s27_s15, 512  ;;  %p202_p6 = scmp.lt.s32.totalorder %s27_s15, %s27_s15 }
   0xe   :  { %p198_p5 = scmp.ne.s32.totalorder %s27_s15, %s197_s19  ;;  %p203_p7 = scmp.lt.s32.totalorder %s197_s19, %s197_s19 }
  0x10   :  { %p204_p8 = por %p203_p7, %p202_p6 }
  0x12   :  { %p205_p9 = pnand %p204_p8, %p198_p5 }
  0x14   :  { %208 = shalt.err (!%p205_p9)
}
  0x15   :  { %s237_s20 = smov 128   ;;  %s238_s21 = smov 8  }
  0x16   :  { %32 = dma.hbm_to_vmem [thread:$0]  %s275_s1, 512, %s27_s15, [#allocation6], %s237_s20, %s237_s20, %s238_s21  }
  0x17   :  { %229 = dma.done.wait [#allocation3], 128  }
  0x18   :  { %230 = vsyncadd [#allocation3], 4294967168 }
  0x19   :  { %231 = dma.done.wait [#allocation6], 512  }
  0x1a   :  { %232 = vsyncadd [#allocation6], 4294966784  ;;  %v239_v0 = vmov 0.0   ;;  %vm240_vm0 = vmmov 0   ;;  %v45_v1 = vld [vmem:[#allocation5 + $0x18] sm:$0xff]  ;;  %v44_v2 = vld [vmem:[#allocation5 + $0x10] sm:$0xff] }
  0x1b   :  { %151 = vmatprep.subr.mxu0 %v239_v0  ;;  %159 = vmatprep.mubr.msk.f32.mxu0 %vm240_vm0, %v239_v0  ;;  %v43_v3 = vld [vmem:[#allocation5 + $0x8] sm:$0xff]  ;;  %v42_v4 = vld [vmem:[#allocation5] sm:$0xff]  ;;  %v41_v5 = vld [vmem:[#allocation2] sm:$0xff]  ;;  %vm53_vm1 = vcmask 261120   ;;  %s241_s24 = smov [#allocation7]  }
  0x1c   :  { %152 = vmatpush3.msra.mxu0 %v45_v1  ;;  %v144_v6 = vld [vmem:[%s276_s2] ss:$0 sm:$0xff]  ;;  %s134_s25 = sshll.u32 %s241_s24, 4  ;;  %s135_s25 = int_to_ptr.vmem [resolvable:$true] %s134_s25 }
  0x1d   :  { %153 = vmatprep.subr.mxu0 %v239_v0  ;;  %s209_s26 = scalar_lea.vmem %s135_s25, 128  ;;  %p214_p11 = scmp.lt.s32.totalorder %s135_s25, %s135_s25 }
  0x1e   :  { %154 = vmatpush3.msra.mxu0 %v44_v2  ;;  %p210_p10 = scmp.ne.s32.totalorder %s135_s25, %s209_s26  ;;  %p215_p12 = scmp.lt.s32.totalorder %s209_s26, %s209_s26 }
  0x1f   :  { %155 = vmatprep.subr.mxu0 %v239_v0 }
  0x20   :  { %156 = vmatpush3.msra.mxu0 %v43_v3  ;;  %p216_p13 = por %p215_p12, %p214_p11 }
  0x21   :  { %157 = vmatprep.subr.mxu0 %v239_v0 }
  0x22   :  { %158 = vmatpush3.msra.mxu0 %v42_v4  ;;  %p217_p0 = pnand %p216_p13, %p210_p10 }
  0x23   :  { %160 = vmatmul.mubr.msk.f32.vlgmr.msra.gmra.mxu0 %vm53_vm1, %v41_v5 }
  0xe3   :  { %v123_v7 = vpop.f32.mrf.mxu0 }
  0xe4   :  { %v124_v8 = vadd.f32 %v144_v6, %v123_v7 }
  0xe5   :  { %v161_v9 = vpop.f32.mrf.mxu0 }
  0xe6   :  { %127 = vst [vmem:[#allocation7] sm:$0xff] %v124_v8 }
  0xe7   :  { %220 = shalt.err (!%p217_p0)
}
  0xe8   :  { %137 = dma.vmem_to_hbm [thread:$0]  %s135_s25, 128, %s277_s3, [#allocation4]  }
  0xe9   :  { %233 = dma.done.wait [#allocation4], 128  }
  0xea   :  { %234 = vsyncadd [#allocation4], 4294967168 }
  0xeb   :  { %141 = vsyncpa [#allocation3], 1 }
  0xec   :  { %142 = vsyncpa [#allocation6], 1 }
  0xed   :  { %143 = vsyncpa [#allocation4], 1 }

</bundles_post_ra>
